<compile_context>
chip_gen: v7x
topology: tpu7x:2x2x1
jax: 0.10.0
libtpu: 0.0.40
codegen_flags: <defaults>
</compile_context>

<pallas_src>
import jax
import jax.numpy as jnp
from jax.experimental import pallas as pl
from jax.experimental.pallas import tpu as pltpu


def _ensemble_kernel(w_ref, x_ref, o_ref):
    # w_ref: (M, 1)  raw (pre-softmax) ensemble weights (same block every step)
    # x_ref: (M, TB) per-model outputs, batch on the lane axis
    # o_ref: (1, TB) weighted-sum logits (lane-dense)
    rw = w_ref[...].astype(jnp.float32)                     # (M, 1)
    m = jnp.max(rw, axis=0, keepdims=True)                  # (1, 1) stable softmax
    e = jnp.exp(rw - m)                                     # (M, 1)
    w = e / jnp.sum(e, axis=0, keepdims=True)               # (M, 1) exact softmax

    x = x_ref[...].astype(jnp.float32)                      # (M, TB)
    o_ref[...] = jnp.sum(w * x, axis=0, keepdims=True).astype(o_ref.dtype)


def _round_up(v, m):
    return -(-v // m) * m


def _vmem_capacity_bytes(default=64 * 1024 * 1024):
    # Conservative default = v7x (64 MiB per TensorCore).
    try:
        cap = getattr(pltpu.get_tpu_info(), "vmem_capacity_bytes", None)
        return int(cap) if cap else default
    except Exception:
        return default


def _pick_tile(num_models, b128, itemsize):
    """Pick the lane tile TB (multiple of 128) and grid size along B."""
    sub_m = _round_up(max(num_models, 1), 8)      # sublane padding of the M axis
    # Per-lane VMEM cost: double-buffered input tile + double-buffered output
    # row (output padded to 8 sublanes in VMEM).
    bytes_per_lane = 2 * sub_m * itemsize + 2 * 8 * 4
    # Spend ~1/3 of physical VMEM on our buffers, capped at 40 MiB:
    #   v5e/v6e (128 MiB) -> 40 MiB budget -> TB ~ 320K lanes (M<=8, f32)
    #   v7x     ( 64 MiB) -> ~21 MiB budget -> TB ~ 170K lanes
    budget = min(_vmem_capacity_bytes() // 3, 40 * 1024 * 1024)
    cap_lanes = max(128, (budget // bytes_per_lane) // 128 * 128)

    n = b128 // 128                                # number of 128-lane groups
    grid_b = -(-n // (cap_lanes // 128))           # fewest steps with TB <= cap
    # v7x megacore: the grid axis is "parallel"; make sure both TensorCores get
    # work once the problem is big enough that an extra ~0.35us step is noise.
    if grid_b == 1 and b128 >= 32 * 1024:
        grid_b = 2
    elif grid_b > 2 and grid_b % 2 == 1:
        grid_b += 1                                # prefer an even step count
    tb = (-(-n // grid_b)) * 128                   # balanced tile, multiple of 128
    grid_b = -(-b128 // tb)
    return tb, grid_b, sub_m


def trainable_ensemble_forward_stacked(raw_weights, model_outputs_mb):
    """Fast path.  model_outputs_mb: (M, B) -- per-model outputs stacked on
    axis 0 (produce them in this layout upstream).  Returns logits (B,) f32."""
    M, B = model_outputs_mb.shape
    assert raw_weights.shape == (M,)

    b128 = _round_up(B, 128)
    x = model_outputs_mb
    if b128 != B:
        # Pad only to the next multiple of 128 (never to a TB multiple); a
        # no-op for the common 128-aligned case, trivial for small B.
        x = jnp.pad(x, ((0, 0), (0, b128 - B)))

    itemsize = jnp.dtype(x.dtype).itemsize
    tb, grid_b, sub_m = _pick_tile(M, b128, itemsize)

    # Exact double-buffered VMEM needs + slack for compiler-internal scratch.
    buf_bytes = (2 * sub_m * tb * itemsize        # input tiles
                 + 2 * 8 * tb * 4                 # output tiles (8-sublane padded)
                 + 2 * 8 * 128 * 4)               # raw-weights tile
    vmem_limit = int(buf_bytes + 4 * 1024 * 1024)

    cost = pl.CostEstimate(
        flops=2 * B * M,
        transcendentals=grid_b * M,
        bytes_accessed=M * B * itemsize + B * 4 + M * 4,
    )

    out = pl.pallas_call(
        _ensemble_kernel,
        out_shape=jax.ShapeDtypeStruct((1, b128), jnp.float32),
        grid=(grid_b,),
        in_specs=[
            pl.BlockSpec((M, 1), lambda i: (0, 0)),      # raw weights (resident)
            pl.BlockSpec((M, tb), lambda i: (0, i)),     # model-output lane tile
        ],
        out_specs=pl.BlockSpec((1, tb), lambda i: (0, i)),   # lane-dense output
        compiler_params=pltpu.CompilerParams(
            dimension_semantics=("parallel",),           # v7x: shard B over 2 TCs
            vmem_limit_bytes=vmem_limit,
        ),
        cost_estimate=cost,
    )(raw_weights.reshape(M, 1), x)

    return out[0, :B]


def trainable_ensemble_forward(raw_weights, model_outputs):
    """PyTorch-compatible signature: model_outputs (B, M) -> logits (B,).

    The transpose below is layout plumbing (one extra HBM pass on a
    memory-bound op); for best performance produce the per-model outputs
    already stacked as (M, B) and call trainable_ensemble_forward_stacked.
    """
    return trainable_ensemble_forward_stacked(
        raw_weights, jnp.transpose(model_outputs, (1, 0)))


if __name__ == "__main__":
    key = jax.random.PRNGKey(0)

    num_models = 4
    batch = 8

    # nn.Parameter(torch.ones(num_models)) -> deterministic ones init.
    raw_weights = jnp.ones((num_models,), dtype=jnp.float32)

    # Per-model outputs, produced directly in the kernel's (M, B) layout
    # (as an upstream producer stacking model outputs on axis 0 would).
    outputs_mb = jax.random.normal(key, (num_models, batch), dtype=jnp.float32)

    # Fast (M, B) path.
    logits = trainable_ensemble_forward_stacked(raw_weights, outputs_mb)
    jax.block_until_ready(logits)

    # PyTorch-signature (B, M) compatibility path on the same data.
    logits_bm = trainable_ensemble_forward(raw_weights, outputs_mb.T)
    jax.block_until_ready(logits_bm)

    # Reference (plain JAX), mirrors the PyTorch forward exactly.
    ref_w = jax.nn.softmax(raw_weights, axis=0)
    ref = jnp.sum(ref_w[None, :] * outputs_mb.T, axis=1)

    assert logits.shape == (batch,)
    assert jnp.allclose(logits, ref, atol=1e-5, rtol=1e-5), (logits, ref)
    assert jnp.allclose(logits_bm, ref, atol=1e-5, rtol=1e-5), (logits_bm, ref)

    print("KERNEL_OK")
</pallas_src>

<mosaic_0001>
module attributes {stable_mosaic.version = 11 : i64} {
  func.func @_ensemble_kernel(%arg0: i32, %arg1: memref<4x1xf32, #tpu.memory_space<vmem>>, %arg2: memref<4x128xf32, #tpu.memory_space<vmem>>, %arg3: memref<1x128xf32, #tpu.memory_space<vmem>>) attributes {dimension_semantics = [#tpu.dimension_semantics<parallel>], iteration_bounds = array<i64: 1>, scalar_prefetch = 0 : i64, scratch_operands = 0 : i64, tpu.core_type = #tpu.core_type<tc>, window_params = [{pipeline_mode = #tpu.pipeline_mode<synchronous>, transform_indices = @transform_0, window_bounds = array<i64: 4, 1>}, {transform_indices = @transform_1, window_bounds = array<i64: 4, 128>}, {transform_indices = @transform_2, window_bounds = array<i64: 1, 128>}]} {
    %c0 = arith.constant 0 : index
    %c0_0 = arith.constant 0 : index
    %0 = vector.load %arg1[%c0, %c0_0] : memref<4x1xf32, #tpu.memory_space<vmem>>, vector<4x1xf32>
    %cst = arith.constant dense<0xFF800000> : vector<1xf32>
    %1 = vector.multi_reduction <maximumf>, %0, %cst [0] : vector<4x1xf32> to vector<1xf32>
    %2 = vector.shape_cast %1 : vector<1xf32> to vector<1x1xf32>
    %3 = vector.broadcast %2 : vector<1x1xf32> to vector<4x1xf32>
    %4 = arith.subf %0, %3 : vector<4x1xf32>
    %5 = math.exp %4 : vector<4x1xf32>
    %cst_1 = arith.constant dense<0.000000e+00> : vector<1xf32>
    %6 = vector.multi_reduction <add>, %5, %cst_1 [0] : vector<4x1xf32> to vector<1xf32>
    %7 = vector.shape_cast %6 : vector<1xf32> to vector<1x1xf32>
    %8 = vector.broadcast %7 : vector<1x1xf32> to vector<4x1xf32>
    %9 = arith.divf %5, %8 : vector<4x1xf32>
    %c0_2 = arith.constant 0 : index
    %c0_3 = arith.constant 0 : index
    %10 = vector.load %arg2[%c0_2, %c0_3] : memref<4x128xf32, #tpu.memory_space<vmem>>, vector<4x128xf32>
    %11 = vector.broadcast %9 : vector<4x1xf32> to vector<4x128xf32>
    %12 = arith.mulf %11, %10 : vector<4x128xf32>
    %cst_4 = arith.constant dense<0.000000e+00> : vector<128xf32>
    %13 = vector.multi_reduction <add>, %12, %cst_4 [0] : vector<4x128xf32> to vector<128xf32>
    %14 = vector.shape_cast %13 : vector<128xf32> to vector<1x128xf32>
    %c0_5 = arith.constant 0 : index
    %c0_6 = arith.constant 0 : index
    %15 = vector.load %arg3[%c0_5, %c0_6] : memref<1x128xf32, #tpu.memory_space<vmem>>, vector<1x128xf32>
    tpu.vector_store %arg3[%c0_5, %c0_6], %14 {strides = array<i32>} : memref<1x128xf32, #tpu.memory_space<vmem>>, vector<1x128xf32>,
    return
  }
  func.func @transform_0(%arg0: i32) -> (i32, i32) {
    %c0_i32 = arith.constant 0 : i32
    %c0_i32_0 = arith.constant 0 : i32
    %c0_i32_1 = arith.constant 0 : i32
    return %c0_i32, %c0_i32_0 : i32, i32
  }
  func.func @transform_1(%arg0: i32) -> (i32, i32) {
    %c0_i32 = arith.constant 0 : i32
    %c0_i32_0 = arith.constant 0 : i32
    return %c0_i32, %arg0 : i32, i32
  }
  func.func @transform_2(%arg0: i32) -> (i32, i32) {
    %c0_i32 = arith.constant 0 : i32
    %c0_i32_0 = arith.constant 0 : i32
    return %c0_i32, %arg0 : i32, i32
  }
}

</mosaic_0001>

<bundles_post_ra>
// kernel: tpu_custom_call.1
= control target key start
LH: loop header
LB: loop body
LE: loop exit
PB: predicated region body
PF: predicated region fallthrough
CT: control target
= control target key end

     0   :  { %vm13_vm0 = vcmask 3072   ;;  %v94_v1 = vmov 0   ;;  %s129_s0 = inlined_call_operand.vmem [shape: f32[4,1], index: 0, kind: input, shape index: {}]   ;;  %s130_s1 = inlined_call_operand.vmem [shape: f32[4,128], index: 1, kind: input, shape index: {}]   ;;  %s131_s2 = inlined_call_operand.hbm [shape: f32[1,128], index: 2, kind: output, shape index: {}]  }
   0x1   :  { %v12_v0 = vld [vmem:[%s129_s0] sm:$0xf]  ;;  %65 = vset.pattern.permute.xlu0 %v94_v1 }
   0x2   :  { %v14_v2 = vsel %vm13_vm0, %v12_v0, -inf }
   0x3   :  { %7 = vsyncpa [#allocation3], 0  ;;  %v15_v3 = vrot.slane %v14_v2, 4  ;;  %v33_v21 = vld [vmem:[%s130_s1] sm:$0xf]  ;;  %vm40_vm1 = vcmask 1043456  }
   0x4   :  { %s95_s12 = smov [#allocation2]  }
   0x5   :  { %v16_v4 = vmax.f32 %v14_v2, %v15_v3  ;;  %s55_s13 = sshll.u32 %s95_s12, 4  ;;  %s56_s13 = int_to_ptr.vmem [resolvable:$true] %s55_s13 }
   0x6   :  { %s70_s14 = scalar_lea.vmem %s56_s13, 16  ;;  %s74_s15 = scalar_lea.vmem %s56_s13, 32 }
   0x7   :  { %v17_v5 = vrot.slane %v16_v4, 2  ;;  %p71_p0 = scmp.ne.s32.totalorder %s56_s13, %s70_s14  ;;  %p75_p1 = scmp.lt.s32.totalorder %s56_s13, %s56_s13 }
   0x8   :  { %p76_p2 = scmp.lt.s32.totalorder %s74_s15, %s70_s14 }
   0x9   :  { %v18_v6 = vmax.f32 %v16_v4, %v17_v5 }
   0xa   :  { %p77_p3 = por %p76_p2, %p75_p1 }
   0xb   :  { %v19_v7 = vrot.slane %v18_v6, 1 }
   0xc   :  { %p78_p4 = pnand %p77_p3, %p71_p0 }
   0xd   :  { %v20_v8 = vmax.f32 %v18_v6, %v19_v7 }
   0xf   :  { %v21_v9 = vsub.f32 %v12_v0, %v20_v8 }
  0x11   :  { %v22_v10 = vmul.f32 1.442695, %v21_v9 }
  0x13   :  { %66 = vpow2.f32 %v22_v10 }
  0x1d   :  { %v67_v11 = vpop.eup %66 }
  0x1e   :  { %v24_v12 = vsel %vm13_vm0, %v67_v11, 0.0 }
  0x1f   :  { %v25_v13 = vrot.slane %v24_v12, 4 }
  0x21   :  { %v26_v14 = vadd.f32 %v25_v13, %v24_v12 }
  0x23   :  { %v27_v15 = vrot.slane %v26_v14, 2 }
  0x25   :  { %v28_v16 = vadd.f32 %v27_v15, %v26_v14 }
  0x27   :  { %v29_v17 = vrot.slane %v28_v16, 1 }
  0x29   :  { %v30_v18 = vadd.f32 %v29_v17, %v28_v16 }
  0x2b   :  { %68 = vrcp.f32 %v30_v18 }
  0x35   :  { %v69_v19 = vpop.eup %68 }
  0x36   :  { %v32_v20 = vmul.f32 %v69_v19, %v67_v11 }
  0x38   :  { %36 = vperm.xlu0 %65, %v32_v20  }
  0xb7   :  { %v37_v22 = vpop.permute.xlu0 %36 }
  0xb8   :  { %v39_v23 = vmul.f32 %v37_v22, %v33_v21 }
  0xba   :  { %v41_v24 = vsel %vm40_vm1, %v39_v23, 0.0 }
  0xbb   :  { %v42_v25 = vrot.slane %v41_v24, 4 }
  0xbd   :  { %v43_v26 = vadd.f32 %v42_v25, %v41_v24 }
  0xbf   :  { %v44_v27 = vrot.slane %v43_v26, 2 }
  0xc1   :  { %v45_v28 = vadd.f32 %v44_v27, %v43_v26 }
  0xc3   :  { %v46_v29 = vrot.slane %v45_v28, 1 }
  0xc5   :  { %v47_v30 = vadd.f32 %v46_v29, %v45_v28 }
  0xc7   :  { %48 = vst [vmem:[#allocation2] sm:$0x1] %v47_v30 }
  0xc8   :  { %81 = shalt.err (!%p78_p4)
}
  0xc9   :  { %s82_s17 = scalar_lea.hbm %s131_s2, 16 }
  0xca   :  { %p83_p5 = scmp.ne.s32.totalorder %s131_s2, %s82_s17  ;;  %p86_p6 = scmp.lt.u32.totalorder %s82_s17, %s131_s2 }
  0xcc   :  { %p88_p7 = pnand %p86_p6, %p83_p5 }
  0xce   :  { %91 = shalt.err (!%p88_p7)
}
  0xcf   :  { %58 = dma.vmem_to_hbm [thread:$0]  %s56_s13, 16, %s131_s2, [#allocation3]  }
  0xd0   :  { %92 = dma.done.wait [#allocation3], 16  }
  0xd1   :  { %93 = vsyncadd [#allocation3], 4294967280 }
  0xd2   :  { %62 = vsyncpa [#allocation3], 1 }

</bundles_post_ra>
